<compile_context>
chip_gen: v5e
topology: v5e:2x2
jax: 0.10.0
libtpu: 0.0.40
codegen_flags: <defaults>
</compile_context>

<pallas_src>
import jax
import jax.numpy as jnp
from jax.experimental import pallas as pl
from jax.experimental.pallas import tpu as pltpu


def _cls_kernel(x_ref, w_ref, b_ref, out_ref):
    # In-kernel bf16 cast of the f32 x tile (saves a wrapper-side HBM pass).
    x_bf = x_ref[...].astype(jnp.bfloat16)
    # Folded affine map: one lane-dense (TB,512)@(512,128) MXU matmul, f32 acc.
    acc = jnp.dot(x_bf, w_ref[...], preferred_element_type=jnp.float32)
    # Store only the narrow (padded-to-8) logit lanes -> 16x less HBM writeback.
    n_out = out_ref.shape[-1]
    out_ref[...] = (acc[:, :n_out] + b_ref[...]).astype(out_ref.dtype)


def classification_layer(x, w1, b1, w2, b2, *, tb=2048):
    """Fused ClassificationLayer forward.

    x: [B, 512] f32, w1: [512, 256], b1: [256], w2: [256, 2], b2: [2]
    (weights stored [in, out], i.e. transposed vs torch's [out, in]).
    Returns [B, 2] f32 logits == Linear(512,256) -> Dropout(0) -> Linear(256,2).
    """
    B, D_in = x.shape
    D_out = w2.shape[1]
    MXU_PAD = 128   # lane-dense folded weight width for the MXU
    OUT_PAD = 8     # narrow output tile (2 logits padded to 8 lanes)

    # ---- fold the two linears (Dropout p=0 is identity) ----
    # TODO(synk): for dropout_rate > 0 this folding is invalid; use two matmuls
    # with a pltpu.prng_seed/prng_random_bits mask on the hidden activations.
    w_eff = jnp.dot(w1, w2, preferred_element_type=jnp.float32)       # (512, 2)
    b_eff = jnp.dot(b1, w2, preferred_element_type=jnp.float32) + b2  # (2,)
    w_eff = jnp.pad(w_eff, ((0, 0), (0, MXU_PAD - D_out))).astype(jnp.bfloat16)
    b_eff = jnp.pad(b_eff.reshape(1, D_out), ((0, 0), (0, OUT_PAD - D_out))
                    ).astype(jnp.float32)

    # ---- batch tiling: TB multiple of 8, >= 2 tiles when B allows (so the
    #      "parallel" axis can feed both v7x TensorCores), no explicit padding
    #      of x (ragged last block is handled by Pallas) ----
    B8 = ((B + 7) // 8) * 8
    half8 = max(8, ((B8 // 2 + 7) // 8) * 8)
    TB = min(tb, half8) if B8 >= 16 else 8
    n_tiles = pl.cdiv(B, TB)

    flops = 2 * B * D_in * MXU_PAD
    bytes_accessed = (x.size * 4            # f32 x read once, in-kernel cast
                      + w_eff.size * 2 + b_eff.size * 4
                      + B * OUT_PAD * 4)    # narrow f32 logit writeback

    out_padded = pl.pallas_call(
        _cls_kernel,
        out_shape=jax.ShapeDtypeStruct((B, OUT_PAD), jnp.float32),
        grid_spec=pltpu.PrefetchScalarGridSpec(
            num_scalar_prefetch=0,
            grid=(n_tiles,),
            in_specs=[
                pl.BlockSpec((TB, D_in), lambda i: (i, 0)),       # x tile (f32, pipelined)
                pl.BlockSpec((D_in, MXU_PAD), lambda i: (0, 0)),  # folded weight (resident)
                pl.BlockSpec((1, OUT_PAD), lambda i: (0, 0)),     # folded bias (resident)
            ],
            out_specs=pl.BlockSpec((TB, OUT_PAD), lambda i: (i, 0)),
        ),
        compiler_params=pltpu.CompilerParams(
            dimension_semantics=("parallel",),   # shard batch tiles across TCs
            vmem_limit_bytes=32 << 20,           # TB=2048 working set ~14 MiB
        ),
        cost_estimate=pl.CostEstimate(
            flops=flops, transcendentals=0, bytes_accessed=bytes_accessed),
    )(x, w_eff, b_eff)

    # strip the lane padding of the logits (tiny (B, 8) -> (B, 2) slice)
    return out_padded[:, :D_out]


def _init_params(key):
    """Deterministic init mirroring PyTorch nn.Linear default (U[-1/sqrt(fan_in), +])."""
    k1, k2, k3, k4 = jax.random.split(key, 4)
    bound1 = 1.0 / jnp.sqrt(512.0)
    bound2 = 1.0 / jnp.sqrt(256.0)
    # Stored as [in, out] (transposed relative to torch's [out, in]).
    w1 = jax.random.uniform(k1, (512, 256), jnp.float32, -bound1, bound1)
    b1 = jax.random.uniform(k2, (256,), jnp.float32, -bound1, bound1)
    w2 = jax.random.uniform(k3, (256, 2), jnp.float32, -bound2, bound2)
    b2 = jax.random.uniform(k4, (2,), jnp.float32, -bound2, bound2)
    return w1, b1, w2, b2


if __name__ == "__main__":
    key = jax.random.PRNGKey(0)
    k_x, k_p = jax.random.split(key)

    # Small, non-multiple-of-8 batch: exercises the ragged last block (no
    # explicit padding) and the >=2-tiles clamp (TB=16 -> grid=(2,)).
    B = 20
    x = jax.random.normal(k_x, (B, 512), jnp.float32)
    w1, b1, w2, b2 = _init_params(k_p)

    out = classification_layer(x, w1, b1, w2, b2)
    out = jax.block_until_ready(out)
    assert out.shape == (B, 2)

    # Reference with the same folded bf16-input / f32-accumulate math.
    w_eff_ref = (w1 @ w2).astype(jnp.bfloat16)
    b_eff_ref = b1 @ w2 + b2
    ref_bf = jnp.dot(x.astype(jnp.bfloat16), w_eff_ref,
                     preferred_element_type=jnp.float32) + b_eff_ref
    assert jnp.allclose(out, ref_bf, atol=1e-2, rtol=1e-2)

    # Sanity against the full-f32 unfused reference (bf16 rounding tolerance).
    ref_f32 = (x @ w1 + b1) @ w2 + b2
    assert jnp.allclose(out, ref_f32, atol=5e-2, rtol=5e-2)

    print("KERNEL_OK")
</pallas_src>

<mosaic_0001>
module attributes {stable_mosaic.version = 11 : i64} {
  func.func @_cls_kernel(%arg0: i32, %arg1: memref<16x512xf32, #tpu.memory_space<vmem>>, %arg2: memref<512x128xbf16, #tpu.memory_space<vmem>>, %arg3: memref<1x8xf32, #tpu.memory_space<vmem>>, %arg4: memref<16x8xf32, #tpu.memory_space<vmem>>) attributes {dimension_semantics = [#tpu.dimension_semantics<parallel>], iteration_bounds = array<i64: 2>, scalar_prefetch = 0 : i64, scratch_operands = 0 : i64, tpu.core_type = #tpu.core_type<tc>, window_params = [{transform_indices = @transform_0, window_bounds = array<i64: 16, 512>}, {pipeline_mode = #tpu.pipeline_mode<synchronous>, transform_indices = @transform_1, window_bounds = array<i64: 512, 128>}, {pipeline_mode = #tpu.pipeline_mode<synchronous>, transform_indices = @transform_2, window_bounds = array<i64: 1, 8>}, {transform_indices = @transform_3, window_bounds = array<i64: 16, 8>}]} {
    %c0 = arith.constant 0 : index
    %c0_0 = arith.constant 0 : index
    %0 = vector.load %arg1[%c0, %c0_0] : memref<16x512xf32, #tpu.memory_space<vmem>>, vector<16x512xf32>
    %1 = arith.truncf %0 : vector<16x512xf32> to vector<16x512xbf16>
    %c0_1 = arith.constant 0 : index
    %c0_2 = arith.constant 0 : index
    %2 = vector.load %arg2[%c0_1, %c0_2] : memref<512x128xbf16, #tpu.memory_space<vmem>>, vector<512x128xbf16>
    %cst = arith.constant dense<0.000000e+00> : vector<16x128xf32>
    %3 = tpu.matmul %1, %2, %cst {dimension_numbers = #tpu.dot_dimension_numbers<[1], [0], [0], [1], [0, 0, 1, 1], [], []>} : vector<16x512xbf16>, vector<512x128xbf16>, vector<16x128xf32> -> vector<16x128xf32>
    %4 = vector.extract_strided_slice %3 {offsets = [0, 0], sizes = [16, 8], strides = [1, 1]} : vector<16x128xf32> to vector<16x8xf32>
    %c0_3 = arith.constant 0 : index
    %c0_4 = arith.constant 0 : index
    %5 = vector.load %arg3[%c0_3, %c0_4] : memref<1x8xf32, #tpu.memory_space<vmem>>, vector<1x8xf32>
    %6 = vector.broadcast %5 : vector<1x8xf32> to vector<16x8xf32>
    %7 = arith.addf %4, %6 : vector<16x8xf32>
    %c0_5 = arith.constant 0 : index
    %c0_6 = arith.constant 0 : index
    %8 = vector.load %arg4[%c0_5, %c0_6] : memref<16x8xf32, #tpu.memory_space<vmem>>, vector<16x8xf32>
    tpu.vector_store %arg4[%c0_5, %c0_6], %7 {strides = array<i32>} : memref<16x8xf32, #tpu.memory_space<vmem>>, vector<16x8xf32>,
    return
  }
  func.func @transform_0(%arg0: i32) -> (i32, i32) {
    %c0_i32 = arith.constant 0 : i32
    %c0_i32_0 = arith.constant 0 : i32
    return %arg0, %c0_i32 : i32, i32
  }
  func.func @transform_1(%arg0: i32) -> (i32, i32) {
    %c0_i32 = arith.constant 0 : i32
    %c0_i32_0 = arith.constant 0 : i32
    %c0_i32_1 = arith.constant 0 : i32
    return %c0_i32, %c0_i32_0 : i32, i32
  }
  func.func @transform_2(%arg0: i32) -> (i32, i32) {
    %c0_i32 = arith.constant 0 : i32
    %c0_i32_0 = arith.constant 0 : i32
    %c0_i32_1 = arith.constant 0 : i32
    return %c0_i32, %c0_i32_0 : i32, i32
  }
  func.func @transform_3(%arg0: i32) -> (i32, i32) {
    %c0_i32 = arith.constant 0 : i32
    %c0_i32_0 = arith.constant 0 : i32
    return %arg0, %c0_i32 : i32, i32
  }
}

</mosaic_0001>

<bundles_post_ra>
// kernel: tpu_custom_call.1
= control target key start
LH: loop header
LB: loop body
LE: loop exit
PB: predicated region body
PF: predicated region fallthrough
CT: control target
= control target key end

     0   :  { %8 = vsyncpa [#allocation3], 0  ;;  %s1498_s0 = inlined_call_operand.hbm [shape: f32[20,512], index: 0, kind: input, shape index: {}]   ;;  %s1499_s1 = inlined_call_operand.hbm [shape: bf16[512,128], index: 1, kind: input, shape index: {}]   ;;  %s1500_s2 = inlined_call_operand.vmem [shape: f32[1,8], index: 2, kind: input, shape index: {}]   ;;  %s1501_s3 = inlined_call_operand.vmem [shape: f32[20,8], index: 3, kind: output, shape index: {}]  }
   0x1   :  { %10 = vsyncpa [#allocation3 + $0x1], 0 }
   0x2   :  { %11 = vsyncpa [#allocation5], 0  ;;  %s1310_s12 = smov 0   ;;  %s1312_s13 = smov 0  }
   0x3   :  { %s1314_s14 = smov 0   ;;  %s1316_s15 = smov 0  }
   0x4 LB: > { %s1329_s16 = sadd.s32 4294967295, %s1250_s15   ;;  %s1332_s17 = sadd.s32 1, %s1250_s15   ;;  %s1250_s15 = sphi %s1316_s15, %s1513_s15   ;;  %s1246_s14 = sphi %s1314_s14, %s1512_s14   ;;  %s1242_s13 = sphi %s1312_s13, %s1511_s13   ;;  %s1238_s12 = sphi %s1310_s12, %s1510_s12  }
   0x5   : > { %s21_s18 = ssub.s32 %s1250_s15, %s1332_s17  ;;  %s24_s19 = sadd.s32 1, %s1246_s14 }
   0x6   : > { %p22_p0 = scmp.eq.s32.totalorder %s21_s18, 0  ;;  %p31_p1 = scmp.ne.s32.totalorder %s1246_s14, %s1242_s13 }
   0x7   : > { %p32_p2 = scmp.eq.s32.totalorder %s1250_s15, 0  ;;  %p37_p3 = scmp.ne.s32.totalorder %s1242_s13, %s1238_s12 }
   0x8   : > { %s1342_s20 = scalar_select %p22_p0, %s1246_s14, %s24_s19  }
   0x9   : > { %p1344_p4 = por %p32_p2, %p31_p1  ;;  %p1502_p5 = scmp.eq.s32.totalorder %s1329_s16, 0 }
   0xa   : > { %p103_p6 = scmp.eq.s32.totalorder %s1329_s16, 1  ;;  %p799_p7 = scmp.ge.s32.totalorder %s1250_s15, 1 }
   0xb   : > { %p1353_p8 = por %p1502_p5, %p37_p3  ;;  %p116_p9 = scmp.lt.s32.totalorder %s1250_s15, 3 }
   0xc   : > { %p1358_p10 = por %p103_p6, %p31_p1  ;;  %s127_s27 = sshll.u32 %s1499_s1, 4  ;;  %s128_s27 = int_to_ptr.hbm [resolvable:$true] %s127_s27 }
   0xd   : > { %p1362_p11 = pnand %p799_p7, %p116_p9  ;;  %s1284_s28 = smov [#allocation4]  }
   0xe   : > { %s129_s29 = sshll.u32 %s1284_s28, 4  ;;  %s1285_s30 = smov 64   ;;  %s130_s29 = int_to_ptr.vmem [resolvable:$true] %s129_s29 }
   0xf   : > { %p1003_p12 = pneg %p1362_p11  ;;  %s1286_s4 = smov 4  }
  0x10   : > { %p801_p0 = scmp.ge.s32.totalorder %s1250_s15, 2 }
  0x11   : > { %p1004_p13 = pnand %p1003_p12, %p1502_p5 }
  0x12   : > { %142 = sbr.rel (%p801_p0) target bundleno = 59 (0x3b), region = 24 }
  0x13   : > { %1006 = dma.hbm_to_vmem [thread:$0]  (!%p1004_p13), %s128_s27, 4096, %s130_s29, [#allocation5], %s1285_s30, %s1285_s30, %s1286_s4  }
  0x17   : > { %145 = sbr.rel (!%p1344_p4) target bundleno = 59 (0x3b), region = 28  ;;  %s146_s5 = sand.u32 (%p1344_p4), 1, %s1246_s14  }
  0x18   : > { %s803_s6 = sshll.u32 (%p1344_p4), %s1250_s15, 1  ;;  %s802_s7 = sshll.u32 (%p1344_p4), %s146_s5, 6 }
  0x19   : > { %s152_s8 = ssub.s32 (%p1344_p4), 3, %s803_s6  ;;  %s1381_s12 = scalar_lea.sflag (%p1344_p4), [#allocation3], %s146_s5 }
  0x1a   : > { %p153_p1 = scmp.lt.s32.totalorder (%p1344_p4), %s152_s8, 2  ;;  %s150_s18 = scalar_lea.vmem (%p1344_p4), [#allocation2], %s802_s7 }
  0x1c   : > { %s1515_s8 = smov (!%p153_p1, %s152_s8), 2 }
  0x1d   : > { %s960_s9 = sshll.u32 %s1515_s8, 5 }
  0x1e   : > { %s157_s10 = ssub.s32 64, %s960_s9 }
  0x1f   : > { %s158_s11 = sshll.u32 %s157_s10, 4 }
  0x20   : > { %159 = vsyncadd %s1381_s12, %s158_s11  ;;  %p1384_p2 = scmp.ne.s32.totalorder %s960_s9, 0  ;;  %s962_s21 = sshll.u32 %s1250_s15, 6 }
  0x21   : > { %s163_s27 = scalar_lea.hbm %s1498_s0, %s962_s21  ;;  %s1392_s28 = sshll.u32 %s150_s18, 4  ;;  %s168_s28 = int_to_ptr.vmem [resolvable:$true] %s1392_s28 }
  0x22   : > { %s165_s29 = sshll.u32 %s163_s27, 4  ;;  %s810_s30 = sshll.u32 %s1515_s8, 9  ;;  %s1395_s29 = int_to_ptr.hbm [resolvable:$true] %s165_s29 }
  0x23   : > { %s1141_s4 = sshra.s32 %s1395_s29, 4  ;;  %s1143_s5 = sshrl.u32 %s810_s30, 4  ;;  %s1142_s4 = int_to_ptr.hbm [resolvable:$true] %s1141_s4 }
  0x24   : > { %s1148_s6 = scalar_lea.hbm %s1142_s4, %s1143_s5  ;;  %s1152_s9 = scalar_lea.hbm %s1498_s0, 96 }
  0x25   : > { %p1149_p3 = scmp.ne.s32.totalorder %s1142_s4, %s1148_s6  ;;  %p1153_p7 = scmp.lt.s32.totalorder %s1142_s4, %s1498_s0 }
  0x26   : > { %p1154_p9 = scmp.lt.s32.totalorder %s1152_s9, %s1148_s6 }
  0x27   : > { %p1150_p4 = pnand %p1149_p3, %p1384_p2 }
  0x28   : > { %p1155_p12 = por %p1154_p9, %p1153_p7 }
  0x29   : > { %p1151_p6 = pneg %p1150_p4 }
  0x2b   : > { %p1156_p13 = pnand %p1155_p12, %p1151_p6 }
  0x2d   : > { %1159 = shalt.err (!%p1156_p13)
}
  0x2e   : > { %s1160_s18 = sshra.s32 %s168_s28, 4  ;;  %s1287_s25 = smov [#allocation2]   ;;  %s1161_s18 = int_to_ptr.vmem [resolvable:$true] %s1160_s18 }
  0x2f   : > { %s1167_s21 = scalar_lea.vmem %s1161_s18, %s1143_s5  ;;  %s1171_s26 = scalar_lea.vmem %s1287_s25, 128 }
  0x30   : > { %p1168_p0 = scmp.ne.s32.totalorder %s1161_s18, %s1167_s21  ;;  %p1173_p4 = scmp.lt.s32.totalorder %s1171_s26, %s1167_s21 }
  0x32   : > { %p1169_p1 = pnand %p1168_p0, %p1384_p2 }
  0x34   : > { %p1170_p3 = pneg %p1169_p1 }
  0x36   : > { %p1175_p5 = pnand %p1173_p4, %p1170_p3 }
  0x38   : > { %1178 = shalt.err (!%p1175_p5)
}
  0x39   : > { %s1288_s27 = smov 512   ;;  %s1289_s4 = smov 32  }
  0x3a   : > { %173 = dma.hbm_to_vmem [thread:$0]  (%p1384_p2), %s1395_s29, %s810_s30, %s168_s28, %s1381_s12, %s1288_s27, %s1288_s27, %s1289_s4  }
  0x3b PF: > { %179 = sbr.rel (%p1362_p11) target bundleno = 288 (0x120), region = 32  ;;  %s1424_s5 = sand.u32 (!%p1362_p11), 1, %s1242_s13  }
  0x3c   : > { %s812_s6 = sshll.u32 (!%p1362_p11), %s1424_s5, 6  ;;  %s182_s15 = scalar_lea.sflag (!%p1362_p11), [#allocation3], %s1424_s5 }
  0x3d   : > { %s1428_s7 = scalar_lea.vmem (!%p1362_p11), [#allocation2], %s812_s6 }
  0x40   : > { %1229 = dma.done.wait (%p1353_p8), %s182_s15, 1024  }
  0x41   : > { %1231 = vsyncadd (%p1353_p8), %s182_s15, 4294966272  ;;  %p1508_p5 = scmp.eq.s32.totalorder %s1329_s16, 0 }
  0x43   : > { %1233 = dma.done.wait (%p1508_p5), [#allocation5], 4096   ;;  %p1509_p11 = pmov %p1508_p5 }
  0x44   : > { %v970_v0 = vld [vmem:[#allocation4 + $0x38] sm:$0xff]  ;;  %v969_v4 = vld [vmem:[#allocation4 + $0x30] sm:$0xff]  ;;  %v968_v8 = vld [vmem:[#allocation4 + $0x28] sm:$0xff]  ;;  %s814_s22 = sshll.u32 %s1424_s5, 4  ;;  %vm554_vm0 = vcmask 64512   ;;  %s944_s19 = sshll.u32 (%p1358_p10), %s1329_s16, 1 }
  0x45   : > { %1235 = vsyncadd (%p1509_p11), [#allocation5], 4294963200  ;;  %v978_v1 = vld [vmem:[#allocation4 + $0x78] sm:$0xff]  ;;  %492 = vmatpush.bf16.msra.mxu0 %v970_v0  ;;  %v977_v5 = vld [vmem:[#allocation4 + $0x70] sm:$0xff]  ;;  %s1450_s12 = scalar_lea.vmem [#allocation6], %s814_s22   ;;  %s995_s28 = sshll.u32 (%p1358_p10), %s1329_s16, 4 }
  0x46   : > { %v986_v2 = vld [vmem:[#allocation4 + $0xb8] sm:$0xff]  ;;  %506 = vmatpush.bf16.msra.mxu1 %v978_v1  ;;  %v985_v6 = vld [vmem:[#allocation4 + $0xb0] sm:$0xff]  ;;  %v976_v9 = vld [vmem:[#allocation4 + $0x68] sm:$0xff]  ;;  %s565_s29 = ssub.s32 (%p1358_p10), 3, %s944_s19  ;;  %s1461_s10 = scalar_lea.vmem (%p1358_p10), %s1501_s3, %s995_s28  }
  0x47   : > { %v994_v3 = vld [vmem:[#allocation4 + $0xf8] sm:$0xff]  ;;  %520 = vmatpush.bf16.msra.mxu2 %v986_v2  ;;  %v993_v7 = vld [vmem:[#allocation4 + $0xf0] sm:$0xff]  ;;  %v984_v10 = vld [vmem:[#allocation4 + $0xa8] sm:$0xff]  ;;  %p566_p8 = scmp.lt.s32.totalorder (%p1358_p10), %s565_s29, 2 }
  0x48   : > { %534 = vmatpush.bf16.msra.mxu3 %v994_v3  ;;  %v992_v11 = vld [vmem:[#allocation4 + $0xe8] sm:$0xff]  ;;  %v967_v12 = vld [vmem:[#allocation4 + $0x20] sm:$0xff]  ;;  %v966_v16 = vld [vmem:[#allocation4 + $0x18] sm:$0xff] }
  0x49   : > { %493 = vmatpush.bf16.msra.mxu0 %v969_v4  ;;  %v975_v13 = vld [vmem:[#allocation4 + $0x60] sm:$0xff]  ;;  %v974_v17 = vld [vmem:[#allocation4 + $0x58] sm:$0xff]  ;;  %v965_v20 = vld [vmem:[#allocation4 + $0x10] sm:$0xff] }
  0x4a   : > { %507 = vmatpush.bf16.msra.mxu1 %v977_v5  ;;  %v983_v14 = vld [vmem:[#allocation4 + $0xa0] sm:$0xff]  ;;  %v982_v18 = vld [vmem:[#allocation4 + $0x98] sm:$0xff]  ;;  %v973_v21 = vld [vmem:[#allocation4 + $0x50] sm:$0xff] }
  0x4b   : > { %521 = vmatpush.bf16.msra.mxu2 %v985_v6  ;;  %v991_v15 = vld [vmem:[#allocation4 + $0xe0] sm:$0xff]  ;;  %v990_v19 = vld [vmem:[#allocation4 + $0xd8] sm:$0xff]  ;;  %v981_v22 = vld [vmem:[#allocation4 + $0x90] sm:$0xff] }
  0x4c   : > { %535 = vmatpush.bf16.msra.mxu3 %v993_v7  ;;  %v989_v23 = vld [vmem:[#allocation4 + $0xd0] sm:$0xff]  ;;  %v964_v24 = vld [vmem:[#allocation4 + $0x8] sm:$0xff]  ;;  %v963_v28 = vld [vmem:[#allocation4] sm:$0xff] }
  0x4d   : > { %494 = vmatpush.bf16.msra.mxu0 %v968_v8  ;;  %v972_v25 = vld [vmem:[#allocation4 + $0x48] sm:$0xff]  ;;  %v971_v29 = vld [vmem:[#allocation4 + $0x40] sm:$0xff]  ;;  %v226_v36 = vld [vmem:[%s1428_s7 + $0x10] sm:$0xff] }
  0x4e   : > { %508 = vmatpush.bf16.msra.mxu1 %v976_v9  ;;  %v980_v26 = vld [vmem:[#allocation4 + $0x88] sm:$0xff]  ;;  %v979_v30 = vld [vmem:[#allocation4 + $0x80] sm:$0xff]  ;;  %v230_v37 = vld [vmem:[%s1428_s7 + $0x30] sm:$0xff] }
  0x4f   : > { %522 = vmatpush.bf16.msra.mxu2 %v984_v10  ;;  %v988_v27 = vld [vmem:[#allocation4 + $0xc8] sm:$0xff]  ;;  %v987_v31 = vld [vmem:[#allocation4 + $0xc0] sm:$0xff]  ;;  %v227_v38 = vld [vmem:[%s1428_s7 + $0x18] sm:$0xff]  ;;  %v234_v42 = vpack.c.bf16 %v230_v37, %v226_v36 }
  0x50   : > { %536 = vmatpush.bf16.msra.mxu3 %v992_v11  ;;  %v224_v32 = vld [vmem:[%s1428_s7] sm:$0xff]  ;;  %v225_v34 = vld [vmem:[%s1428_s7 + $0x8] sm:$0xff]  ;;  %v231_v39 = vld [vmem:[%s1428_s7 + $0x38] sm:$0xff] }
  0x51   : > { %495 = vmatpush.bf16.msra.mxu0 %v967_v12  ;;  %v228_v33 = vld [vmem:[%s1428_s7 + $0x20] sm:$0xff]  ;;  %v229_v35 = vld [vmem:[%s1428_s7 + $0x28] sm:$0xff]  ;;  %v235_v43 = vpack.c.bf16 %v231_v39, %v227_v38 }
  0x52   : > { %509 = vmatpush.bf16.msra.mxu1 %v975_v13  ;;  %v232_v40 = vpack.c.bf16 %v228_v33, %v224_v32  ;;  %v233_v41 = vpack.c.bf16 %v229_v35, %v225_v34  ;;  %v1110_v50 = vld [vmem:[%s1500_s2] ss:$0 sm:$0xff] }
  0x53   : > { %523 = vmatpush.bf16.msra.mxu2 %v983_v14 }
  0x54   : > { %537 = vmatpush.bf16.msra.mxu3 %v991_v15 }
  0x55   : > { %496 = vmatpush.bf16.msra.mxu0 %v966_v16 }
  0x56   : > { %510 = vmatpush.bf16.msra.mxu1 %v974_v17 }
  0x57   : > { %524 = vmatpush.bf16.msra.mxu2 %v982_v18 }
  0x58   : > { %538 = vmatpush.bf16.msra.mxu3 %v990_v19 }
  0x59   : > { %497 = vmatpush.bf16.msra.mxu0 %v965_v20 }
  0x5a   : > { %511 = vmatpush.bf16.msra.mxu1 %v973_v21 }
  0x5b   : > { %525 = vmatpush.bf16.msra.mxu2 %v981_v22 }
  0x5c   : > { %539 = vmatpush.bf16.msra.mxu3 %v989_v23 }
  0x5d   : > { %498 = vmatpush.bf16.msra.mxu0 %v964_v24 }
  0x5e   : > { %512 = vmatpush.bf16.msra.mxu1 %v972_v25 }
  0x5f   : > { %526 = vmatpush.bf16.msra.mxu2 %v980_v26 }
  0x60   : > { %540 = vmatpush.bf16.msra.mxu3 %v988_v27 }
  0x61   : > { %499 = vmatpush.bf16.msra.mxu0 %v963_v28 }
  0x62   : > { %513 = vmatpush.bf16.msra.mxu1 %v971_v29 }
  0x63   : > { %527 = vmatpush.bf16.msra.mxu2 %v979_v30 }
  0x64   : > { %541 = vmatpush.bf16.msra.mxu3 %v987_v31  ;;  %500 = vmatmul.bf16.vlgmr.msra.gmra.mxu0 %v232_v40 }
  0x65   : > { %514 = vmatmul.bf16.vlgmr.msra.gmra.mxu1 %v233_v41 }
  0x66   : > { %528 = vmatmul.bf16.vlgmr.msra.gmra.mxu2 %v234_v42 }
  0x67   : > { %542 = vmatmul.bf16.vlgmr.msra.gmra.mxu3 %v235_v43 }
  0xe1   : > { %v501_v44 = vpop.f32.mrf.mxu0 }
  0xe2   : > { %v515_v45 = vpop.f32.mrf.mxu1 }
  0xe3   : > { %v516_v46 = vadd.f32 %v515_v45, %v501_v44 }
  0xe9   : > { %v529_v47 = vpop.f32.mrf.mxu2  ;;  %v503_v52 = vpop.f32.mrf.mxu0 }
  0xea   : > { %v543_v48 = vpop.f32.mrf.mxu3  ;;  %v530_v49 = vadd.f32 %v529_v47, %v516_v46  ;;  %v517_v53 = vpop.f32.mrf.mxu1 }
  0xeb   : > { %v518_v55 = vadd.f32 %v517_v53, %v503_v52 }
  0xec   : > { %v544_v51 = vadd.f32 %v543_v48, %v530_v49 }
  0xee   : > { %v552_v54 = vadd.f32 %v1110_v50, %v544_v51 }
  0xf0   : > { %555 = vst.msk [vmem:[%s1450_s12] sm:$0xff] %vm554_vm0, %v552_v54 }
  0xf1   : > { %v531_v56 = vpop.f32.mrf.mxu2 }
  0xf2   : > { %v532_v57 = vadd.f32 %v531_v56, %v518_v55  ;;  %v545_v58 = vpop.f32.mrf.mxu3 }
  0xf4   : > { %v546_v59 = vadd.f32 %v545_v58, %v532_v57  ;;  %563 = sbr.rel (!%p1358_p10) target bundleno = 288 (0x120), region = 44 }
  0xf6   : > { %v553_v60 = vadd.f32 %v1110_v50, %v546_v59 }
  0xf8   : > { %556 = vst.msk [vmem:[%s1450_s12 + $0x8] sm:$0xff] %vm554_vm0, %v553_v60 }
  0xf9   : > { %s1517_s29 = smov (!%p566_p8, %s565_s29), 2 }
  0xfa   : > { %s945_s11 = sshll.u32 %s1517_s29, 3 }
  0xfb   : > { %p948_p2 = scmp.eq.s32.totalorder %s945_s11, 0 }
  0xfc   : > { %s1467_s23 = sshrl.u32 (!%p948_p2), %s1517_s29, 1 }
  0xfd   : > { %574 = sbr.rel (%p948_p2) target bundleno = 288 (0x120), region = 48  ;;  %p949_p10 = scmp.le.s32.totalorder (!%p948_p2), %s1467_s23, 0 }
 0x102   : > { %742 = sbr.rel (%p949_p10) target bundleno = 271 (0x10f), region = 130  ;;  %s1252_s16 = smov (!%p949_p10), %s1461_s10  }
 0x103   : > { %s1256_s18 = smov (!%p949_p10), %s1450_s12   ;;  %s1260_s21 = smov (!%p949_p10), 0  }
 0x104   : > { %s1264_s25 = smov (!%p949_p10), 0  }
 0x107 LB: >> { %v639_v61 = vld [vmem:[%s1258_s18] sm:$0xff]  ;;  %v641_v62 = vld [vmem:[%s1258_s18 + $0x8] sm:$0xff]  ;;  %s643_s26 = sadd.s32 1, %s1262_s21  ;;  %s633_s25 = sadd.s32 1, %s1266_s25   ;;  %s1266_s25 = sphi %s1264_s25, %s633_s25   ;;  %s1262_s21 = sphi %s1260_s21, %s1261_s21   ;;  %s1258_s18 = sphi %s1256_s18, %s648_s18   ;;  %s1254_s16 = sphi %s1252_s16, %s649_s16  }
 0x108   : >> { %640 = vst [vmem:[%s1254_s16] sm:$0xff] %v639_v61  ;;  %p644_p6 = scmp.ge.s32.totalorder %s643_s26, %s1467_s23  ;;  %p632_p7 = scmp.ge.s32.totalorder %s633_s25, %s1467_s23 }
 0x109   : >> { %642 = vst [vmem:[%s1254_s16 + $0x8] sm:$0xff] %v641_v62 }
 0x10a   : >> { %s1519_s26 = smov (%p644_p6, %s643_s26), 0  ;;  %635 = sbr.rel (!%p632_p7) target bundleno = 263 (0x107), region = 136 }
 0x10b   : >> { %s950_s27 = sshll.u32 %s1519_s26, 4  ;;  %s1261_s21 = smov %s1519_s26  }
 0x10c   : >> { %s648_s18 = scalar_lea.vmem %s1450_s12, %s950_s27 [#allocation6]   ;;  %s649_s16 = scalar_lea.vmem %s1461_s10, %s950_s27  }
 0x10f PF: > { %s1477_s4 = sand.u32 1, %s1517_s29   ;;  %s996_s5 = sshll.u32 %s1467_s23, 4 }
 0x110   : > { %s654_s6 = scalar_lea.vmem %s1450_s12, %s996_s5 [#allocation6]   ;;  %s656_s15 = scalar_lea.vmem %s1461_s10, %s996_s5  }
 0x111   : > { %p955_p9 = scmp.le.s32.totalorder %s1477_s4, 0 }
 0x112   : > { %s1268_s7 = smov (!%p955_p9), %s656_s15   ;;  %s1272_s22 = smov (!%p955_p9), %s654_s6  }
 0x113   : > { %756 = sbr.rel (%p955_p9) target bundleno = 288 (0x120), region = 141  ;;  %s1276_s24 = smov (!%p955_p9), 0  }
 0x114   : > { %s1280_s8 = smov (!%p955_p9), 0  }
 0x118 LB: >> { %v666_v63 = vld [vmem:[%s1274_s22] sm:$0xff]  ;;  %s668_s19 = sadd.s32 1, %s1278_s24  ;;  %s660_s8 = sadd.s32 1, %s1282_s8   ;;  %s1282_s8 = sphi %s1280_s8, %s660_s8   ;;  %s1278_s24 = sphi %s1276_s24, %s1277_s24   ;;  %s1274_s22 = sphi %s1272_s22, %s673_s22   ;;  %s1270_s7 = sphi %s1268_s7, %s674_s7  }
 0x119   : >> { %667 = vst [vmem:[%s1270_s7] sm:$0xff] %v666_v63  ;;  %p669_p12 = scmp.ge.s32.totalorder %s668_s19, %s1477_s4  ;;  %p659_p13 = scmp.ge.s32.totalorder %s660_s8, %s1477_s4 }
 0x11b   : >> { %s1521_s19 = smov (%p669_p12, %s668_s19), 0  ;;  %662 = sbr.rel (!%p659_p13) target bundleno = 280 (0x118), region = 147 }
 0x11c   : >> { %s956_s12 = sshll.u32 %s1521_s19, 3  ;;  %s1277_s24 = smov %s1521_s19  }
 0x11d   : >> { %s673_s22 = scalar_lea.vmem %s654_s6, %s956_s12 [#allocation6]   ;;  %s674_s7 = scalar_lea.vmem %s656_s15, %s956_s12  }
 0x120 PF: > { %p14_p0 = scmp.ge.s32.totalorder %s1332_s17, 4   ;;  %s1510_s12 = smov %s1242_s13 }
 0x121   : > { %s1511_s13 = smov %s1246_s14  ;;  %s1512_s14 = smov %s1342_s20 }
 0x122   : > { %s1513_s15 = smov %s1332_s17  ;;  %16 = sbr.rel (!%p14_p0) target bundleno = 4 (0x4), region = 158 }
 0x127   :  { %690 = vsyncpa [#allocation3], 1 }
 0x128   :  { %692 = vsyncpa [#allocation3 + $0x1], 1 }
 0x129   :  { %693 = vsyncpa [#allocation5], 1 }

</bundles_post_ra>
